<compile_context>
chip_gen: v5e
topology: v5e:2x2
jax: 0.10.0
libtpu: 0.0.40
codegen_flags: <defaults>
</compile_context>

<pallas_src>
import jax
import jax.numpy as jnp
from jax import lax
from jax.experimental import pallas as pl
from jax.experimental.pallas import tpu as pltpu

# --- module hyper-parameters (from MoE.py) ---
N_EMBED = 128
NUM_EXPERTS = 8
TOP_K = 2

_ROW_BLOCK_CAP = 2048   # per review: big tiles -> ~85%+ of HBM roofline, few grid steps
_MIN_BLOCKS = 4         # v7x: keep both TensorCores busy/balanced on the parallel axis


def _round_up(x: int, m: int) -> int:
    return ((x + m - 1) // m) * m


def _choose_block_rows(rows: int) -> int:
    """Row-block size: as large as possible (<= 2048, multiple of 8 sublanes) while
    leaving >= _MIN_BLOCKS grid steps (v7x megacore balance) and keeping the tail
    padding small."""
    n_blocks = max(_MIN_BLOCKS, pl.cdiv(rows, _ROW_BLOCK_CAP))
    blk = _round_up(pl.cdiv(rows, n_blocks), 8)
    return max(8, min(blk, _ROW_BLOCK_CAP))


def _router_kernel(x_ref, w_ref, b_ref, noise_ref, out_ref, idx_ref):
    """One grid step == one block of flattened (batch*time) rows.

    x_ref     : (M, C)   bf16  activations (rows of mh_output)
    w_ref     : (C, 2E)  bf16  [W_route.T | W_noise.T]  (pre-transposed, fused)
    b_ref     : (1, 2E)  f32   [b_route   | b_noise]
    noise_ref : (M, E)   f32   standard-normal noise (torch.randn_like equivalent)
    out_ref   : (M, E)   f32   router probabilities (softmax over top-k, zeros elsewhere)
    idx_ref   : (M, K)   i32   top-k expert indices (descending by noisy logit)
    """
    n_exp = noise_ref.shape[-1]

    # Single fused projection on the MXU: (M, C)bf16 @ (C, 2E)bf16 -> f32 accum.
    y = jnp.dot(x_ref[...], w_ref[...], preferred_element_type=jnp.float32)
    y = y + b_ref[...]
    logits = y[:, :n_exp]                                              # (M, E)
    noise_logits = y[:, n_exp:]                                        # (M, E)

    # softplus(z) = max(z, 0) + log(1 + exp(-|z|))   (numerically stable, f32)
    sp = jnp.maximum(noise_logits, 0.0) + jnp.log(1.0 + jnp.exp(-jnp.abs(noise_logits)))
    noisy = logits + noise_ref[...] * sp                               # (M, E)

    col = lax.broadcasted_iota(jnp.int32, noisy.shape, 1)              # lane index, (M, E)
    neg = jnp.float32(-1e30)                                           # finite "-inf" (robust)

    # Iterative top-k (k = TOP_K, statically unrolled): lane-wise max, lowest-index
    # argmax via where+min (ties -> lowest index, like lax.top_k), mask winner out.
    work = noisy
    keep = None
    m_top = None
    idx_cols = []
    for k in range(TOP_K):
        m = jnp.max(work, axis=-1, keepdims=True)                      # (M, 1)
        if k == 0:
            m_top = m
        i = jnp.min(jnp.where(work == m, col, n_exp), axis=-1, keepdims=True)  # (M, 1) i32
        sel = col == i
        keep = sel if keep is None else (keep | sel)
        idx_cols.append(i)
        work = jnp.where(sel, neg, work)

    # Softmax over the kept (top-k) entries only; everything else is exactly 0,
    # matching F.softmax of the -inf-scattered tensor in the PyTorch module.
    p = jnp.where(keep, jnp.exp(noisy - m_top), 0.0)                   # (M, E)
    denom = jnp.sum(p, axis=-1, keepdims=True)                         # in [1, TOP_K]
    # Exact normalization (review: downstream MoE weighting needs sum==1; the divide
    # is on an (M,1) column and not on the critical path).
    out_ref[...] = (p / denom).astype(out_ref.dtype)
    idx_ref[...] = jnp.concatenate(idx_cols, axis=-1).astype(jnp.int32)


@jax.jit
def noisy_topk_router(mh_output, w_route, b_route, w_noise, b_noise, noise):
    """mh_output: (B, T, C) float -> (router_output (B, T, E) f32, indices (B, T, K) i32)."""
    B, T, C = mh_output.shape
    E = w_route.shape[0]
    rows = B * T

    # bf16 activations: the x stream dominates HBM traffic; bf16 halves it and is
    # native on every generation's MXU.  (In a real pipeline the producer should
    # already emit bf16 so this cast fuses upstream / disappears.)
    x2 = mh_output.reshape(rows, C).astype(jnp.bfloat16)
    n2 = noise.reshape(rows, E).astype(jnp.float32)

    # Layout plumbing in the wrapper (free): pre-transpose + fuse both linears.
    w_cat = jnp.concatenate([w_route.T, w_noise.T], axis=1).astype(jnp.bfloat16)  # (C, 2E)
    b_cat = jnp.concatenate([b_route, b_noise]).reshape(1, 2 * E).astype(jnp.float32)

    blk = _choose_block_rows(rows)
    rows_p = _round_up(rows, blk)
    if rows_p != rows:
        # Pad the flattened rows to a block multiple (keeps the 2-deep pipeline and
        # the parallel split for arbitrary B*T); padded rows are sliced off below.
        pad = rows_p - rows
        x2 = jnp.pad(x2, ((0, pad), (0, 0)))
        n2 = jnp.pad(n2, ((0, pad), (0, 0)))
    n_blocks = rows_p // blk

    cost = pl.CostEstimate(
        flops=2 * rows_p * C * 2 * E + 30 * rows_p * E,
        transcendentals=4 * rows_p * E,          # softplus exp+log, softmax exp, margin
        bytes_accessed=(2 * rows_p * C            # x (bf16)
                        + 4 * rows_p * E          # noise
                        + 2 * C * 2 * E + 4 * 2 * E
                        + 4 * rows_p * E          # router probs out
                        + 4 * rows_p * TOP_K),    # indices out
    )

    router_flat, idx_flat = pl.pallas_call(
        _router_kernel,
        out_shape=(
            jax.ShapeDtypeStruct((rows_p, E), jnp.float32),
            jax.ShapeDtypeStruct((rows_p, TOP_K), jnp.int32),
        ),
        grid_spec=pltpu.PrefetchScalarGridSpec(
            num_scalar_prefetch=0,
            grid=(n_blocks,),
            in_specs=[
                pl.BlockSpec((blk, C), lambda i: (i, 0)),              # x rows (bf16)
                pl.BlockSpec((C, 2 * E), lambda i: (0, 0)),            # fused pre-transposed weights
                pl.BlockSpec((1, 2 * E), lambda i: (0, 0)),            # fused bias
                pl.BlockSpec((blk, E), lambda i: (i, 0)),              # gaussian noise
            ],
            out_specs=[
                pl.BlockSpec((blk, E), lambda i: (i, 0)),              # router probabilities
                pl.BlockSpec((blk, TOP_K), lambda i: (i, 0)),          # top-k indices
            ],
        ),
        compiler_params=pltpu.CompilerParams(
            dimension_semantics=("parallel",),
            # Larger row blocks + double-buffered narrow (lane-padded) tiles and the
            # wide f32 intermediates need more than v5e's 16 MiB default scoped VMEM.
            vmem_limit_bytes=32 * 1024 * 1024,
        ),
        cost_estimate=cost,
    )(x2, w_cat, b_cat, n2)

    router = router_flat[:rows].reshape(B, T, E)
    idx = idx_flat[:rows].reshape(B, T, TOP_K)
    return router, idx


def _reference(mh_output, w_route, b_route, w_noise, b_noise, noise):
    """Pure-JAX reference of the PyTorch forward, with the same explicit noise.
    Mirrors the kernel's bf16 matmul operands (f32 accumulation) so the top-k
    indices can be compared exactly."""
    x = mh_output.astype(jnp.bfloat16)
    logits = jnp.dot(x, w_route.T.astype(jnp.bfloat16),
                     preferred_element_type=jnp.float32) + b_route
    noise_logits = jnp.dot(x, w_noise.T.astype(jnp.bfloat16),
                           preferred_element_type=jnp.float32) + b_noise
    noisy = logits + noise * jax.nn.softplus(noise_logits)
    top_vals, top_idx = lax.top_k(noisy, TOP_K)
    keep = jax.nn.one_hot(top_idx, noisy.shape[-1], dtype=jnp.bool_).any(axis=-2)
    sparse = jnp.where(keep, noisy, -jnp.inf)
    router = jax.nn.softmax(sparse, axis=-1)
    return router, top_idx


if __name__ == "__main__":
    key = jax.random.PRNGKey(0)
    k_x, k_wr, k_br, k_wn, k_bn, k_noise = jax.random.split(key, 6)

    B, T, C, E = 2, 32, N_EMBED, NUM_EXPERTS
    x = jax.random.normal(k_x, (B, T, C), dtype=jnp.float32)

    # PyTorch nn.Linear default init scale: U(-1/sqrt(fan_in), 1/sqrt(fan_in)).
    bound = 1.0 / (C ** 0.5)
    w_route = jax.random.uniform(k_wr, (E, C), jnp.float32, -bound, bound)
    b_route = jax.random.uniform(k_br, (E,), jnp.float32, -bound, bound)
    w_noise = jax.random.uniform(k_wn, (E, C), jnp.float32, -bound, bound)
    b_noise = jax.random.uniform(k_bn, (E,), jnp.float32, -bound, bound)

    # torch.randn_like equivalent, drawn once and shared by kernel + reference.
    noise = jax.random.normal(k_noise, (B, T, E), dtype=jnp.float32)

    router_out, indices = noisy_topk_router(x, w_route, b_route, w_noise, b_noise, noise)
    router_out = jax.block_until_ready(router_out)
    indices = jax.block_until_ready(indices)

    ref_out, ref_idx = _reference(x, w_route, b_route, w_noise, b_noise, noise)

    assert router_out.shape == (B, T, E) and indices.shape == (B, T, TOP_K)
    # bf16 matmul on both sides -> small accumulation-order differences only.
    assert jnp.allclose(router_out, ref_out, atol=2e-3, rtol=2e-3), "router_output mismatch"
    assert jnp.array_equal(indices, ref_idx), "top-k indices mismatch"
    # Exact division in the kernel -> probabilities sum to 1 to f32 rounding.
    assert jnp.allclose(router_out.sum(-1), 1.0, atol=1e-5), "probabilities do not sum to 1"
    # Structural check: probabilities are nonzero exactly at the returned indices.
    nonzero = (router_out > 0).sum(-1)
    assert jnp.all(nonzero == TOP_K), "wrong number of routed experts"

    print("KERNEL_OK")
</pallas_src>

<mosaic_0001>
module attributes {stable_mosaic.version = 11 : i64} {
  func.func @_router_kernel(%arg0: i32, %arg1: memref<16x128xbf16, #tpu.memory_space<vmem>>, %arg2: memref<128x16xbf16, #tpu.memory_space<vmem>>, %arg3: memref<1x16xf32, #tpu.memory_space<vmem>>, %arg4: memref<16x8xf32, #tpu.memory_space<vmem>>, %arg5: memref<16x8xf32, #tpu.memory_space<vmem>>, %arg6: memref<16x2xi32, #tpu.memory_space<vmem>>) attributes {dimension_semantics = [#tpu.dimension_semantics<parallel>], iteration_bounds = array<i64: 4>, scalar_prefetch = 0 : i64, scratch_operands = 0 : i64, tpu.core_type = #tpu.core_type<tc>, window_params = [{transform_indices = @transform_0, window_bounds = array<i64: 16, 128>}, {pipeline_mode = #tpu.pipeline_mode<synchronous>, transform_indices = @transform_1, window_bounds = array<i64: 128, 16>}, {pipeline_mode = #tpu.pipeline_mode<synchronous>, transform_indices = @transform_2, window_bounds = array<i64: 1, 16>}, {transform_indices = @transform_3, window_bounds = array<i64: 16, 8>}, {transform_indices = @transform_4, window_bounds = array<i64: 16, 8>}, {transform_indices = @transform_5, window_bounds = array<i64: 16, 2>}]} {
    %c0 = arith.constant 0 : index
    %c0_0 = arith.constant 0 : index
    %0 = vector.load %arg1[%c0, %c0_0] : memref<16x128xbf16, #tpu.memory_space<vmem>>, vector<16x128xbf16>
    %c0_1 = arith.constant 0 : index
    %c0_2 = arith.constant 0 : index
    %1 = vector.load %arg2[%c0_1, %c0_2] : memref<128x16xbf16, #tpu.memory_space<vmem>>, vector<128x16xbf16>
    %cst = arith.constant dense<0.000000e+00> : vector<16x16xf32>
    %2 = tpu.matmul %0, %1, %cst {dimension_numbers = #tpu.dot_dimension_numbers<[1], [0], [0], [1], [0, 0, 1, 1], [], []>} : vector<16x128xbf16>, vector<128x16xbf16>, vector<16x16xf32> -> vector<16x16xf32>
    %c0_3 = arith.constant 0 : index
    %c0_4 = arith.constant 0 : index
    %3 = vector.load %arg3[%c0_3, %c0_4] : memref<1x16xf32, #tpu.memory_space<vmem>>, vector<1x16xf32>
    %4 = vector.broadcast %3 : vector<1x16xf32> to vector<16x16xf32>
    %5 = arith.addf %2, %4 : vector<16x16xf32>
    %6 = vector.extract_strided_slice %5 {offsets = [0, 0], sizes = [16, 8], strides = [1, 1]} : vector<16x16xf32> to vector<16x8xf32>
    %7 = vector.extract_strided_slice %5 {offsets = [0, 8], sizes = [16, 8], strides = [1, 1]} : vector<16x16xf32> to vector<16x8xf32>
    %cst_5 = arith.constant 0.000000e+00 : f32
    %8 = vector.broadcast %cst_5 : f32 to vector<16x8xf32>
    %9 = arith.maximumf %7, %8 : vector<16x8xf32>
    %10 = math.absf %7 : vector<16x8xf32>
    %cst_6 = arith.constant 0.000000e+00 : f32
    %11 = vector.broadcast %cst_6 : f32 to vector<16x8xf32>
    %12 = arith.subf %11, %10 : vector<16x8xf32>
    %13 = math.exp %12 : vector<16x8xf32>
    %cst_7 = arith.constant 1.000000e+00 : f32
    %14 = vector.broadcast %cst_7 : f32 to vector<16x8xf32>
    %15 = arith.addf %14, %13 : vector<16x8xf32>
    %16 = math.log %15 : vector<16x8xf32>
    %17 = arith.addf %9, %16 : vector<16x8xf32>
    %c0_8 = arith.constant 0 : index
    %c0_9 = arith.constant 0 : index
    %18 = vector.load %arg4[%c0_8, %c0_9] : memref<16x8xf32, #tpu.memory_space<vmem>>, vector<16x8xf32>
    %19 = arith.mulf %18, %17 : vector<16x8xf32>
    %20 = arith.addf %6, %19 : vector<16x8xf32>
    %21 = tpu.iota {dimensions = array<i32: 1>} : vector<16x8xi32>
    %cst_10 = arith.constant dense<0xFF800000> : vector<16xf32>
    %22 = vector.multi_reduction <maximumf>, %20, %cst_10 [1] : vector<16x8xf32> to vector<16xf32>
    %23 = vector.shape_cast %22 : vector<16xf32> to vector<16x1xf32>
    %24 = vector.broadcast %23 : vector<16x1xf32> to vector<16x8xf32>
    %25 = arith.cmpf oeq, %20, %24 : vector<16x8xf32>
    %c8_i32 = arith.constant 8 : i32
    %26 = vector.broadcast %c8_i32 : i32 to vector<16x8xi32>
    %27 = arith.select %25, %21, %26 : vector<16x8xi1>, vector<16x8xi32>
    %cst_11 = arith.constant dense<2147483647> : vector<16xi32>
    %28 = vector.multi_reduction <minsi>, %27, %cst_11 [1] : vector<16x8xi32> to vector<16xi32>
    %29 = vector.shape_cast %28 : vector<16xi32> to vector<16x1xi32>
    %30 = vector.broadcast %29 : vector<16x1xi32> to vector<16x8xi32>
    %31 = arith.cmpi eq, %21, %30 : vector<16x8xi32>
    %cst_12 = arith.constant -1.000000e+30 : f32
    %32 = vector.broadcast %cst_12 : f32 to vector<16x8xf32>
    %33 = arith.select %31, %32, %20 : vector<16x8xi1>, vector<16x8xf32>
    %cst_13 = arith.constant dense<0xFF800000> : vector<16xf32>
    %34 = vector.multi_reduction <maximumf>, %33, %cst_13 [1] : vector<16x8xf32> to vector<16xf32>
    %35 = vector.shape_cast %34 : vector<16xf32> to vector<16x1xf32>
    %36 = vector.broadcast %35 : vector<16x1xf32> to vector<16x8xf32>
    %37 = arith.cmpf oeq, %33, %36 : vector<16x8xf32>
    %c8_i32_14 = arith.constant 8 : i32
    %38 = vector.broadcast %c8_i32_14 : i32 to vector<16x8xi32>
    %39 = arith.select %37, %21, %38 : vector<16x8xi1>, vector<16x8xi32>
    %cst_15 = arith.constant dense<2147483647> : vector<16xi32>
    %40 = vector.multi_reduction <minsi>, %39, %cst_15 [1] : vector<16x8xi32> to vector<16xi32>
    %41 = vector.shape_cast %40 : vector<16xi32> to vector<16x1xi32>
    %42 = vector.broadcast %41 : vector<16x1xi32> to vector<16x8xi32>
    %43 = arith.cmpi eq, %21, %42 : vector<16x8xi32>
    %44 = arith.ori %31, %43 : vector<16x8xi1>
    %45 = vector.broadcast %23 : vector<16x1xf32> to vector<16x8xf32>
    %46 = arith.subf %20, %45 : vector<16x8xf32>
    %47 = math.exp %46 : vector<16x8xf32>
    %cst_16 = arith.constant 0.000000e+00 : f32
    %48 = vector.broadcast %cst_16 : f32 to vector<16x8xf32>
    %49 = arith.select %44, %47, %48 : vector<16x8xi1>, vector<16x8xf32>
    %cst_17 = arith.constant dense<0.000000e+00> : vector<16xf32>
    %50 = vector.multi_reduction <add>, %49, %cst_17 [1] : vector<16x8xf32> to vector<16xf32>
    %51 = vector.shape_cast %50 : vector<16xf32> to vector<16x1xf32>
    %52 = vector.broadcast %51 : vector<16x1xf32> to vector<16x8xf32>
    %53 = arith.divf %49, %52 : vector<16x8xf32>
    %c0_18 = arith.constant 0 : index
    %c0_19 = arith.constant 0 : index
    %54 = vector.load %arg5[%c0_18, %c0_19] : memref<16x8xf32, #tpu.memory_space<vmem>>, vector<16x8xf32>
    tpu.vector_store %arg5[%c0_18, %c0_19], %53 {strides = array<i32>} : memref<16x8xf32, #tpu.memory_space<vmem>>, vector<16x8xf32>,
    %55 = tpu.concatenate %29, %41 in 1 : vector<16x1xi32>, vector<16x1xi32> -> vector<16x2xi32>
    %c0_20 = arith.constant 0 : index
    %c0_21 = arith.constant 0 : index
    %56 = vector.load %arg6[%c0_20, %c0_21] : memref<16x2xi32, #tpu.memory_space<vmem>>, vector<16x2xi32>
    tpu.vector_store %arg6[%c0_20, %c0_21], %55 {strides = array<i32>} : memref<16x2xi32, #tpu.memory_space<vmem>>, vector<16x2xi32>,
    return
  }
  func.func @transform_0(%arg0: i32) -> (i32, i32) {
    %c0_i32 = arith.constant 0 : i32
    %c0_i32_0 = arith.constant 0 : i32
    return %arg0, %c0_i32 : i32, i32
  }
  func.func @transform_1(%arg0: i32) -> (i32, i32) {
    %c0_i32 = arith.constant 0 : i32
    %c0_i32_0 = arith.constant 0 : i32
    %c0_i32_1 = arith.constant 0 : i32
    return %c0_i32, %c0_i32_0 : i32, i32
  }
  func.func @transform_2(%arg0: i32) -> (i32, i32) {
    %c0_i32 = arith.constant 0 : i32
    %c0_i32_0 = arith.constant 0 : i32
    %c0_i32_1 = arith.constant 0 : i32
    return %c0_i32, %c0_i32_0 : i32, i32
  }
  func.func @transform_3(%arg0: i32) -> (i32, i32) {
    %c0_i32 = arith.constant 0 : i32
    %c0_i32_0 = arith.constant 0 : i32
    return %arg0, %c0_i32 : i32, i32
  }
  func.func @transform_4(%arg0: i32) -> (i32, i32) {
    %c0_i32 = arith.constant 0 : i32
    %c0_i32_0 = arith.constant 0 : i32
    return %arg0, %c0_i32 : i32, i32
  }
  func.func @transform_5(%arg0: i32) -> (i32, i32) {
    %c0_i32 = arith.constant 0 : i32
    %c0_i32_0 = arith.constant 0 : i32
    return %arg0, %c0_i32 : i32, i32
  }
}

</mosaic_0001>

<bundles_post_ra>
// kernel: noisy_topk_router.1
= control target key start
LH: loop header
LB: loop body
LE: loop exit
PB: predicated region body
PF: predicated region fallthrough
CT: control target
= control target key end

     0   :  { %s756_s18 = smov 0   ;;  %s869_s0 = inlined_call_operand.vmem [shape: bf16[64,128], index: 0, kind: input, shape index: {}]   ;;  %s870_s1 = inlined_call_operand.vmem [shape: bf16[128,16], index: 1, kind: input, shape index: {}]   ;;  %s871_s2 = inlined_call_operand.vmem [shape: f32[1,16], index: 2, kind: input, shape index: {}]   ;;  %s872_s3 = inlined_call_operand.vmem [shape: f32[64,8], index: 3, kind: input, shape index: {}]   ;;  %s873_s4 = inlined_call_operand.vmem [shape: f32[64,8], index: 4, kind: output, shape index: {0}]   ;;  %s874_s5 = inlined_call_operand.vmem [shape: s32[64,2], index: 5, kind: output, shape index: {1}]  }
   0x1 LB: > { %s631_s19 = sadd.s32 4294967295, %s723_s18   ;;  %p635_p0 = scmp.ge.s32.totalorder %s723_s18, 1  ;;  %s723_s18 = sphi %s756_s18, %s16_s18  }
   0x2   : > { %p202_p1 = scmp.lt.s32.totalorder %s723_s18, 5 }
   0x4   : > { %p203_p2 = pnand %p635_p0, %p202_p1 }
   0x5   : > { %s636_s28 = sshll.u32 (!%p203_p2), %s631_s19, 1  ;;  %s725_s19 = smov (!%p203_p2), 120  }
   0x6   : > { %206 = sbr.rel (%p203_p2) target bundleno = 1190 (0x4a6), region = 36  ;;  %p241_p3 = scmp.lt.s32.totalorder (!%p203_p2), %s636_s28, 7 }
   0xb   : > { %v690_v0 = vld [vmem:[%s870_s1 + $0x38] sm:$0xff]  ;;  %v689_v1 = vld [vmem:[%s870_s1 + $0x30] sm:$0xff]  ;;  %v688_v2 = vld [vmem:[%s870_s1 + $0x28] sm:$0xff]  ;;  %s876_s28 = smov (!%p241_p3, %s636_s28), 7  ;;  %vm388_vm0 = vcmask 64512   ;;  %v386_v42 = vlaneseq  ;;  %vm523_vm11 = vcmask 7168  }
   0xc   : > { %340 = vmatpush.bf16.msra.mxu0 %v690_v0  ;;  %v687_v3 = vld [vmem:[%s870_s1 + $0x20] sm:$0xff]  ;;  %v686_v4 = vld [vmem:[%s870_s1 + $0x18] sm:$0xff]  ;;  %v685_v5 = vld [vmem:[%s870_s1 + $0x10] sm:$0xff]  ;;  %s637_s10 = sshll.u32 %s876_s28, 2  ;;  %s798_s20 = sshll.u32 %s876_s28, 3  ;;  %vm526_vm12 = vcmask 15360  }
   0xd   : > { %v684_v6 = vld [vmem:[%s870_s1 + $0x8] sm:$0xff]  ;;  %v683_v7 = vld [vmem:[%s870_s1] sm:$0xff]  ;;  %s244_s15 = scalar_lea.vmem %s869_s0, %s637_s10  ;;  %s250_s23 = scalar_lea.vmem %s872_s3, %s798_s20  ;;  %v812_v43 = vand.u32 127, %v386_v42 }
   0xe   : > { %v682_v8 = vld [vmem:[%s244_s15] sm:$0xff]  ;;  %v373_v37 = vld [vmem:[%s250_s23 + $0x8] sm:$0xff]  ;;  %s262_s26 = scalar_lea.vmem %s874_s5, %s798_s20  ;;  %s256_s29 = scalar_lea.vmem %s873_s4, %s798_s20 }
   0xf   : > { %v700_v9 = vld [vmem:[%s871_s2] ss:$0 sm:$0xff] }
  0x10   : > { %341 = vmatpush.bf16.msra.mxu0 %v689_v1  ;;  %v372_v32 = vld [vmem:[%s250_s23] sm:$0xff] }
  0x14   : > { %342 = vmatpush.bf16.msra.mxu0 %v688_v2 }
  0x18   : > { %343 = vmatpush.bf16.msra.mxu0 %v687_v3 }
  0x1c   : > { %344 = vmatpush.bf16.msra.mxu0 %v686_v4 }
  0x20   : > { %345 = vmatpush.bf16.msra.mxu0 %v685_v5 }
  0x24   : > { %346 = vmatpush.bf16.msra.mxu0 %v684_v6 }
  0x28   : > { %347 = vmatpush.bf16.msra.mxu0 %v683_v7 }
  0x2b   : > { %348 = vmatmul.bf16.vlgmr.msra.gmra.mxu0 %v682_v8 }
  0xa8   : > { %v349_v10 = vpop.f32.mrf.mxu0 }
  0xa9   : > { %v350_v11 = vadd.f32 %v700_v9, %v349_v10 }
  0xab   : > { %v356_v12 = vand.u32 2147483647, %v350_v11  ;;  %v354_v25 = vmax.f32 %v350_v11, 0.0 }
  0xad   : > { %v358_v13 = vsub.f32 0.0, %v356_v12 }
  0xaf   : > { %v360_v14 = vmul.f32 1.442695, %v358_v13 }
  0xb0   : > { %v351_v15 = vpop.f32.mrf.mxu0 }
  0xb1   : > { %701 = vpow2.f32 %v360_v14  ;;  %v352_v16 = vadd.f32 %v700_v9, %v351_v15 }
  0xb3   : > { %v357_v17 = vand.u32 2147483647, %v352_v16  ;;  %v355_v29 = vmax.f32 %v352_v16, 0.0 }
  0xb5   : > { %v359_v18 = vsub.f32 0.0, %v357_v17 }
  0xb7   : > { %v702_v19 = vpop.eup %701  ;;  %v362_v20 = vmul.f32 1.442695, %v359_v18 }
  0xb8   : > { %v364_v21 = vadd.f32 1.0, %v702_v19 }
  0xb9   : > { %703 = vpow2.f32 %v362_v20 }
  0xba   : > { %705 = vlog2.f32 %v364_v21 }
  0xbf   : > { %v704_v22 = vpop.eup %703 }
  0xc0   : > { %v706_v23 = vpop.eup %705  ;;  %v365_v24 = vadd.f32 1.0, %v704_v22 }
  0xc1   : > { %v367_v26 = vmul.f32 0.6931472, %v706_v23 }
  0xc2   : > { %707 = vlog2.f32 %v365_v24 }
  0xc3   : > { %v370_v27 = vadd.f32 %v367_v26, %v354_v25 }
  0xc5   : > { %376 = vrot.lane.b32.xlu0 %v370_v27, %s725_s19 }
  0xc8   : > { %v708_v28 = vpop.eup %707 }
  0xc9   : > { %v369_v30 = vmul.f32 0.6931472, %v708_v28 }
  0xcb   : > { %v371_v31 = vadd.f32 %v369_v30, %v355_v29 }
  0xcd   : > { %378 = vrot.lane.b32.xlu0 %v371_v31, %s725_s19 }
 0x137   : > { %v377_v33 = vpop.permute.xlu0 %376 }
 0x138   : > { %v382_v34 = vmul.f32 %v377_v33, %v372_v32 }
 0x13a   : > { %v804_v35 = vadd.f32 %v382_v34, %v350_v11 }
 0x13c   : > { %v389_v36 = vsel %vm388_vm0, %v804_v35, -inf }
 0x13d   : > { %390 = vmax.xlane.f32.xlu1 %v389_v36 }
 0x13f   : > { %v379_v38 = vpop.permute.xlu0 %378 }
 0x140   : > { %v383_v39 = vmul.f32 %v379_v38, %v373_v37 }
 0x142   : > { %v808_v40 = vadd.f32 %v383_v39, %v352_v16 }
 0x144   : > { %v392_v41 = vsel %vm388_vm0, %v808_v40, -inf }
 0x145   : > { %393 = vmax.xlane.f32.xlu1 %v392_v41 }
 0x1b0   : > { %v814_v44 = vpop.xlane.xlu1 %390 }
 0x1b1   : > { %vm395_vm1 = vcmp.eq.f32.partialorder %v804_v35, %v814_v44  ;;  %v477_v30 = vsub.f32 %v804_v35, %v814_v44 }
 0x1b2   : > { %v397_v45 = vsel %vm395_vm1, %v812_v43, 8 }
 0x1b3   : > { %v399_v46 = vsel %vm388_vm0, %v397_v45, 2147483647  ;;  %v479_v31 = vmul.f32 1.442695, %v477_v30 }
 0x1b4   : > { %v401_v47 = vshra.s32 %v399_v46, 16  ;;  %v400_v54 = vand.u32 65535, %v399_v46 }
 0x1b5   : > { %709 = vpow2.f32 %v479_v31 }
 0x1b6   : > { %v403_v48 = vcvt.s32.f32 %v401_v47  ;;  %v402_v56 = vcvt.s32.f32 %v400_v54 }
 0x1b8   : > { %404 = vmin.xlane.f32.xlu2 %v403_v48  ;;  %v820_v49 = vpop.xlane.xlu1 %393 }
 0x1b9   : > { %vm396_vm2 = vcmp.eq.f32.partialorder %v808_v40, %v820_v49  ;;  %v478_v33 = vsub.f32 %v808_v40, %v820_v49 }
 0x1ba   : > { %v398_v50 = vsel %vm396_vm2, %v812_v43, 8 }
 0x1bb   : > { %v414_v51 = vsel %vm388_vm0, %v398_v50, 2147483647  ;;  %v481_v39 = vmul.f32 1.442695, %v478_v33  ;;  %v710_v42 = vpop.eup %709 }
 0x1bc   : > { %v416_v52 = vshra.s32 %v414_v51, 16  ;;  %v415_v58 = vand.u32 65535, %v414_v51 }
 0x1bd   : > { %711 = vpow2.f32 %v481_v39 }
 0x1be   : > { %v418_v53 = vcvt.s32.f32 %v416_v52  ;;  %v417_v60 = vcvt.s32.f32 %v415_v58 }
 0x1c0   : > { %419 = vmin.xlane.f32.xlu2 %v418_v53 }
 0x1c3   : > { %v712_v50 = vpop.eup %711 }
 0x22b   : > { %v405_v55 = vpop.xlane.xlu2 %404 }
 0x22c   : > { %vm406_vm3 = vcmp.eq.f32.partialorder %v403_v48, %v405_v55  ;;  %v411_v62 = vcvt.f32.s32 %v405_v55 }
 0x22d   : > { %v407_v57 = vsel %vm406_vm3, %v402_v56, inf }
 0x22e   : > { %408 = vmin.xlane.f32.xlu0 %v407_v57  ;;  %v412_v0 = vshll.u32 %v411_v62, 16 }
 0x233   : > { %v420_v59 = vpop.xlane.xlu2 %419 }
 0x234   : > { %vm421_vm4 = vcmp.eq.f32.partialorder %v418_v53, %v420_v59  ;;  %v426_v3 = vcvt.f32.s32 %v420_v59 }
 0x235   : > { %v422_v61 = vsel %vm421_vm4, %v417_v60, inf }
 0x236   : > { %423 = vmin.xlane.f32.xlu1 %v422_v61  ;;  %v427_v7 = vshll.u32 %v426_v3, 16 }
 0x2a1   : > { %v409_v63 = vpop.xlane.xlu0 %408 }
 0x2a2   : > { %v410_v1 = vcvt.f32.s32 %v409_v63 }
 0x2a4   : > { %v413_v2 = vadd.s32 %v412_v0, %v410_v1 }
 0x2a6   : > { %vm429_vm5 = vcmp.eq.s32.totalorder %v812_v43, %v413_v2 }
 0x2a7   : > { %v431_v4 = vsel %vm429_vm5, -1e+30, %v804_v35 }
 0x2a8   : > { %v433_v5 = vsel %vm388_vm0, %v431_v4, -inf }
 0x2a9   : > { %v424_v6 = vpop.xlane.xlu1 %423  ;;  %434 = vmax.xlane.f32.xlu2 %v433_v5 }
 0x2aa   : > { %v425_v8 = vcvt.f32.s32 %v424_v6 }
 0x2ac   : > { %v428_v9 = vadd.s32 %v427_v7, %v425_v8 }
 0x2ae   : > { %vm430_vm6 = vcmp.eq.s32.totalorder %v812_v43, %v428_v9 }
 0x2af   : > { %v432_v10 = vsel %vm430_vm6, -1e+30, %v808_v40 }
 0x2b0   : > { %v436_v11 = vsel %vm388_vm0, %v432_v10, -inf }
 0x2b1   : > { %437 = vmax.xlane.f32.xlu1 %v436_v11 }
 0x31c   : > { %v435_v12 = vpop.xlane.xlu2 %434 }
 0x31d   : > { %vm439_vm7 = vcmp.eq.f32.partialorder %v431_v4, %v435_v12 }
 0x31e   : > { %v441_v13 = vsel %vm439_vm7, %v812_v43, 8 }
 0x31f   : > { %v443_v14 = vsel %vm388_vm0, %v441_v13, 2147483647 }
 0x320   : > { %v445_v15 = vshra.s32 %v443_v14, 16  ;;  %v444_v22 = vand.u32 65535, %v443_v14 }
 0x322   : > { %v447_v16 = vcvt.s32.f32 %v445_v15  ;;  %v446_v24 = vcvt.s32.f32 %v444_v22 }
 0x324   : > { %v438_v17 = vpop.xlane.xlu1 %437  ;;  %448 = vmin.xlane.f32.xlu2 %v447_v16 }
 0x325   : > { %vm440_vm8 = vcmp.eq.f32.partialorder %v432_v10, %v438_v17 }
 0x326   : > { %v442_v18 = vsel %vm440_vm8, %v812_v43, 8 }
 0x327   : > { %v458_v19 = vsel %vm388_vm0, %v442_v18, 2147483647 }
 0x328   : > { %v460_v20 = vshra.s32 %v458_v19, 16  ;;  %v459_v26 = vand.u32 65535, %v458_v19 }
 0x32a   : > { %v462_v21 = vcvt.s32.f32 %v460_v20  ;;  %v461_v28 = vcvt.s32.f32 %v459_v26 }
 0x32c   : > { %463 = vmin.xlane.f32.xlu1 %v462_v21 }
 0x397   : > { %v449_v23 = vpop.xlane.xlu2 %448 }
 0x398   : > { %vm450_vm9 = vcmp.eq.f32.partialorder %v447_v16, %v449_v23  ;;  %v455_v32 = vcvt.f32.s32 %v449_v23 }
 0x399   : > { %v451_v25 = vsel %vm450_vm9, %v446_v24, inf }
 0x39a   : > { %452 = vmin.xlane.f32.xlu2 %v451_v25  ;;  %v456_v36 = vshll.u32 %v455_v32, 16 }
 0x39f   : > { %v464_v27 = vpop.xlane.xlu1 %463 }
 0x3a0   : > { %vm465_vm10 = vcmp.eq.f32.partialorder %v462_v21, %v464_v27  ;;  %v470_v41 = vcvt.f32.s32 %v464_v27 }
 0x3a1   : > { %v466_v29 = vsel %vm465_vm10, %v461_v28, inf }
 0x3a2   : > { %467 = vmin.xlane.f32.xlu1 %v466_v29  ;;  %v471_v46 = vshll.u32 %v470_v41, 16 }
 0x40d   : > { %v453_v34 = vpop.xlane.xlu2 %452 }
 0x40e   : > { %v454_v37 = vcvt.f32.s32 %v453_v34 }
 0x410   : > { %v457_v38 = vadd.s32 %v456_v36, %v454_v37 }
 0x412   : > { %v524_v35 = vsel %vm523_vm11, %v413_v2, %v457_v38  ;;  %vm473_vm13 = vcmp.eq.s32.totalorder %v812_v43, %v457_v38 }
 0x413   : > { %527 = vst.msk [vmem:[%s262_s26] sm:$0xff] %vm526_vm12, %v524_v35  ;;  %vm475_vm14 = vmor %vm429_vm5, %vm473_vm13 }
 0x414   : > { %v483_v40 = vsel %vm475_vm14, %v710_v42, 0.0 }
 0x415   : > { %v468_v44 = vpop.xlane.xlu1 %467  ;;  %v485_v45 = vsel %vm388_vm0, %v483_v40, 0.0 }
 0x416   : > { %v469_v47 = vcvt.f32.s32 %v468_v44  ;;  %486 = vadd.xlane.f32.xlu2 %v485_v45 }
 0x418   : > { %v472_v48 = vadd.s32 %v471_v46, %v469_v47 }
 0x41a   : > { %v525_v49 = vsel %vm523_vm11, %v428_v9, %v472_v48  ;;  %vm474_vm15 = vcmp.eq.s32.totalorder %v812_v43, %v472_v48 }
 0x41b   : > { %528 = vst.msk [vmem:[%s262_s26 + $0x8] sm:$0xff] %vm526_vm12, %v525_v49  ;;  %vm476_vm1 = vmor %vm430_vm6, %vm474_vm15 }
 0x41c   : > { %v484_v51 = vsel %vm476_vm1, %v712_v50, 0.0 }
 0x41d   : > { %v488_v52 = vsel %vm388_vm0, %v484_v51, 0.0 }
 0x41e   : > { %489 = vadd.xlane.f32.xlu1 %v488_v52 }
 0x489   : > { %v487_v53 = vpop.xlane.xlu2 %486 }
 0x48a   : > { %713 = vrcp.f32 %v487_v53  ;;  %v502_v58 = vand.u32 2147483648, %v487_v53  ;;  %v500_v60 = vand.u32 2147483647, %v487_v53  ;;  %vm496_vm3 = vweird.f32 %v487_v53 }
 0x48c   : > { %v503_v62 = vor.u32 1.1754944e-38, %v502_v58  ;;  %vm501_vm5 = vcmp.eq.f32.partialorder %v500_v60, 8.507059e+37 }
 0x490   : > { %v714_v54 = vpop.eup %713 }
 0x491   : > { %v492_v55 = vmul.f32 %v714_v54, %v487_v53  ;;  %v490_v56 = vpop.xlane.xlu1 %489  ;;  %vm497_vm2 = vweird.f32 %v714_v54 }
 0x492   : > { %715 = vrcp.f32 %v490_v56  ;;  %vm498_vm4 = vmor %vm496_vm3, %vm497_vm2  ;;  %v517_v4 = vand.u32 2147483648, %v490_v56  ;;  %v515_v6 = vand.u32 2147483647, %v490_v56  ;;  %vm511_vm7 = vweird.f32 %v490_v56 }
 0x493   : > { %v493_v57 = vsub.f32 1.0, %v492_v55 }
 0x494   : > { %v518_v8 = vor.u32 1.1754944e-38, %v517_v4  ;;  %vm516_vm9 = vcmp.eq.f32.partialorder %v515_v6, 8.507059e+37 }
 0x495   : > { %v494_v59 = vmul.f32 %v714_v54, %v493_v57 }
 0x497   : > { %v495_v61 = vadd.f32 %v714_v54, %v494_v59 }
 0x498   : > { %v716_v43 = vpop.eup %715 }
 0x499   : > { %v499_v63 = vsel %vm498_vm4, %v714_v54, %v495_v61  ;;  %v507_v0 = vmul.f32 %v716_v43, %v490_v56  ;;  %vm512_vm6 = vweird.f32 %v716_v43 }
 0x49a   : > { %v504_v1 = vsel %vm501_vm5, %v503_v62, %v499_v63  ;;  %vm513_vm8 = vmor %vm511_vm7, %vm512_vm6 }
 0x49b   : > { %v505_v2 = vmul.f32 %v504_v1, %v483_v40  ;;  %v508_v3 = vsub.f32 1.0, %v507_v0 }
 0x49d   : > { %521 = vst.msk [vmem:[%s256_s29] sm:$0xff] %vm388_vm0, %v505_v2  ;;  %v509_v5 = vmul.f32 %v716_v43, %v508_v3 }
 0x49f   : > { %v510_v7 = vadd.f32 %v716_v43, %v509_v5 }
 0x4a1   : > { %v514_v9 = vsel %vm513_vm8, %v716_v43, %v510_v7 }
 0x4a2   : > { %v519_v10 = vsel %vm516_vm9, %v518_v8, %v514_v9 }
 0x4a3   : > { %v520_v11 = vmul.f32 %v519_v10, %v484_v51 }
 0x4a5   : > { %522 = vst.msk [vmem:[%s256_s29 + $0x8] sm:$0xff] %vm388_vm0, %v520_v11 }
 0x4a6 PF: > { %s16_s18 = sadd.s32 1, %s723_s18  }
 0x4a7   : > { %p13_p4 = scmp.ge.s32.totalorder %s16_s18, 6  }
 0x4a9   :  { %15 = sbr.rel (!%p13_p4) target bundleno = 1 (0x1), region = 81 }

</bundles_post_ra>
